<compile_context>
chip_gen: v5e
topology: v5e:2x2
jax: 0.10.0
libtpu: 0.0.40
codegen_flags: <defaults>
</compile_context>

<pallas_src>
import functools

import jax
import jax.numpy as jnp
from jax import lax
from jax.experimental import pallas as pl
from jax.experimental.pallas import tpu as pltpu

LN_EPS = 1e-5
MAX_BT = 512          # max batch rows per grid step (each step handles bt fwd + bt bwd rows)
LANE = 128
SUBLANE = 8


def _round_up(x, m):
    return (x + m - 1) // m * m


# --------------------------------- kernel -----------------------------------

def _mixnet_kernel(use_res, use_fed, z_real, *refs):
    if use_fed:
        (f_ref, b_ref, wqkv_ref, bqkv_ref, ln1g_ref, ln1b_ref,
         ffw_ref, ffb_ref, ln2g_ref, ln2b_ref,
         hwa_ref, hwb_ref, o_ref, xf_ref, xb_ref) = refs
    else:
        (f_ref, b_ref, wqkv_ref, bqkv_ref, ln1g_ref, ln1b_ref,
         hwa_ref, hwb_ref, o_ref, xf_ref, xb_ref) = refs

    l = pl.program_id(1)
    n_layers = pl.num_programs(1)
    zp = xf_ref.shape[-1]
    scale = 1.0 / (z_real ** 0.5)     # torch scales by the *real* z_dim; pad lanes are 0
    inv_n = 1.0 / z_real

    def layernorm(x, gamma, beta):
        # var = E[x^2] - mu^2  -> the two lane reductions are independent (shorter XLU chain).
        mu = jnp.sum(x, axis=-1, keepdims=True) * inv_n
        ex2 = jnp.sum(x * x, axis=-1, keepdims=True) * inv_n
        var = ex2 - mu * mu
        return (x - mu) * lax.rsqrt(var + LN_EPS) * gamma + beta

    def sigmoid(x):       # one EUP tanh; no exp / reciprocal
        return 0.5 * (jnp.tanh(0.5 * x) + 1.0)

    @pl.when(l == 0)
    def _():
        xf_ref[...] = f_ref[...].astype(jnp.float32)
        xb_ref[...] = b_ref[...].astype(jnp.float32)

    xf = xf_ref[...]
    xb = xb_ref[...]

    # ---- self-attention over the 2 tokens (fused QKV, bf16 MXU operands) ----
    wqkv = wqkv_ref[0]                                   # [ZP, 3ZP] bf16
    bqkv = bqkv_ref[0]                                   # [1, 3ZP]  f32
    qkv_f = jnp.dot(xf.astype(jnp.bfloat16), wqkv,
                    preferred_element_type=jnp.float32) + bqkv
    qkv_b = jnp.dot(xb.astype(jnp.bfloat16), wqkv,
                    preferred_element_type=jnp.float32) + bqkv

    q_f, v_f = qkv_f[:, :zp], qkv_f[:, 2 * zp:]
    q_b, v_b = qkv_b[:, :zp], qkv_b[:, 2 * zp:]
    dk = qkv_b[:, zp:2 * zp] - qkv_f[:, zp:2 * zp]       # k_b - k_f   [bt, ZP]
    dv = v_b - v_f                                       # v_b - v_f   [bt, ZP]

    # 2-way softmax == sigmoid of the score difference (half-slab, no token-swap copy).
    d_f = jnp.sum(q_f * dk, axis=-1, keepdims=True) * scale
    d_b = jnp.sum(q_b * dk, axis=-1, keepdims=True) * scale
    attn_f = v_f + sigmoid(d_f) * dv
    attn_b = v_b - sigmoid(-d_b) * dv

    if use_res:
        xf = xf + attn_f
        xb = xb + attn_b
    else:
        xf = attn_f
        xb = attn_b
    # nn.Dropout is identity in eval mode.
    g1, b1 = ln1g_ref[0], ln1b_ref[0]
    xf = layernorm(xf, g1, b1)
    xb = layernorm(xb, g1, b1)

    if use_fed:
        # Linear(z,4z) -> Linear(4z,z) pre-folded into one [ZP, ZP] bf16 matrix (exact: no act).
        ffw = ffw_ref[0]
        ffb = ffb_ref[0]
        xf = jnp.dot(xf.astype(jnp.bfloat16), ffw,
                     preferred_element_type=jnp.float32) + ffb
        xb = jnp.dot(xb.astype(jnp.bfloat16), ffw,
                     preferred_element_type=jnp.float32) + ffb
        g2, b2 = ln2g_ref[0], ln2b_ref[0]
        xf = layernorm(xf, g2, b2)
        xb = layernorm(xb, g2, b2)

    xf_ref[...] = xf
    xb_ref[...] = xb

    @pl.when(l == n_layers - 1)
    def _():
        # Folded head: out[b] = xf[b]·hwa + xb[b]·hwb  (+hb added wrapper-side).
        # Contract on the last dims (trans-B matmul) so the result is already lane-major
        # [8, bt]; head-weight rows 1..7 are zero padding, keep row 0 only.
        dn = (((1,), (1,)), ((), ()))
        res = (lax.dot_general(hwa_ref[...], xf.astype(jnp.bfloat16), dn,
                               preferred_element_type=jnp.float32)
               + lax.dot_general(hwb_ref[...], xb.astype(jnp.bfloat16), dn,
                                 preferred_element_type=jnp.float32))
        o_ref[0] = res[0:1].astype(o_ref.dtype)          # lane-dense [1, bt] store


# ----------------------------- wrapper / folding -----------------------------

def fold_params(params, *, use_fed=True):
    """Exact wrapper-side folding + 128-lane padding + bf16 cast of MXU operands.

    Call once at parameter-load time (the fold itself is a few matmuls)."""
    L, Z, _ = params["wq"].shape
    ZP = _round_up(Z, LANE)
    pz = ZP - Z

    def pad_mat(w):   # [L, Z, Z] -> [L, ZP, ZP]
        return jnp.pad(w, ((0, 0), (0, pz), (0, pz)))

    def pad_vec(v):   # [L, 1, Z] -> [L, 1, ZP]
        return jnp.pad(v, ((0, 0), (0, 0), (0, pz)))

    # Fused QKV: each segment padded separately so q/k/v start on 128-lane tile boundaries.
    wqkv = jnp.concatenate([pad_mat(params["wq"]), pad_mat(params["wk"]),
                            pad_mat(params["wv"])], axis=-1)                 # [L, ZP, 3ZP]
    bqkv = jnp.concatenate([pad_vec(params["bq"]), pad_vec(params["bk"]),
                            pad_vec(params["bv"])], axis=-1)                 # [L, 1, 3ZP]

    fold = {
        "wqkv": wqkv.astype(jnp.bfloat16),
        "bqkv": bqkv.astype(jnp.float32),
        "ln1g": pad_vec(params["ln1g"]).astype(jnp.float32),   # zero-padded gamma/beta keep
        "ln1b": pad_vec(params["ln1b"]).astype(jnp.float32),   # pad lanes exactly 0
    }
    if use_fed:
        # (x@W1 + b1)@W2 + b2 == x@(W1@W2) + (b1@W2 + b2)   (no activation in between)
        ffw = jnp.einsum("lij,ljk->lik", params["fed1w"], params["fed2w"])
        ffb = jnp.einsum("lij,ljk->lik", params["fed1b"], params["fed2w"]) + params["fed2b"]
        fold["ffw"] = pad_mat(ffw).astype(jnp.bfloat16)
        fold["ffb"] = pad_vec(ffb).astype(jnp.float32)
        fold["ln2g"] = pad_vec(params["ln2g"]).astype(jnp.float32)
        fold["ln2b"] = pad_vec(params["ln2b"]).astype(jnp.float32)

    # Head fold: lin0 -> linw[j]... -> out (no nonlinearity anywhere in the chain).
    w = params["lin0w"]                                   # [2Z, H]
    b = params["lin0b"]                                   # [1, H]
    for j in range(params["linw"].shape[0]):
        b = b @ params["linw"][j] + params["linb"][j]
        w = w @ params["linw"][j]
    b = b @ params["outw"] + params["outb"]               # [1, 1]
    w = w @ params["outw"]                                # [2Z, 1]
    hwa = jnp.pad(w[:Z, 0][None, :], ((0, SUBLANE - 1), (0, pz)))   # [8, ZP], data in row 0
    hwb = jnp.pad(w[Z:, 0][None, :], ((0, SUBLANE - 1), (0, pz)))
    fold["hwa"] = hwa.astype(jnp.bfloat16)
    fold["hwb"] = hwb.astype(jnp.bfloat16)
    fold["hb"] = b.astype(jnp.float32)                    # scalar bias, added wrapper-side
    return fold


def _estimate_vmem_bytes(bt, zp, use_fed):
    f32, bf16 = 4, 2
    per_layer = zp * 3 * zp * bf16 + 3 * zp * f32 + 2 * zp * f32
    if use_fed:
        per_layer += zp * zp * bf16 + 3 * zp * f32
    est = 2 * per_layer                        # per-layer weight stream, double-buffered
    est += 2 * 2 * SUBLANE * zp * bf16         # head weights (constant blocks)
    est += 2 * 2 * bt * zp * f32               # f / b input blocks, double-buffered
    est += 2 * bt * f32                        # output blocks
    est += 2 * bt * zp * f32                   # xf / xb scratch
    est += 14 * bt * zp * f32                  # qkv temporaries + compiler headroom
    return est


def mixnet_forward(forward_rep, backward_rep, folded, *, z_dim, use_res=True, use_fed=True):
    """Eval-mode forward.  `folded` must come from fold_params() (fold once, reuse)."""
    # TODO(synk): use_VIB=True branch (Normal.rsample) not implemented; deterministic path only.
    B, Z = forward_rep.shape
    assert Z == z_dim
    ZP = folded["wqkv"].shape[1]
    L = folded["wqkv"].shape[0]

    # Batch tiling: aim for >= 2 grid steps (keeps both v7x TensorCores busy); pad awkward
    # batch sizes up instead of shrinking to tiny tiles.
    if B <= MAX_BT:
        if B >= 2 * SUBLANE:
            bt = _round_up((B + 1) // 2, SUBLANE)
        else:
            bt = _round_up(max(B, 1), SUBLANE)
    else:
        bt = MAX_BT
    Bp = _round_up(B, bt)
    nb = Bp // bt

    f = jnp.pad(forward_rep.astype(jnp.float32), ((0, Bp - B), (0, ZP - Z)))
    bwd = jnp.pad(backward_rep.astype(jnp.float32), ((0, Bp - B), (0, ZP - Z)))

    weight_names = ["wqkv", "bqkv", "ln1g", "ln1b"]
    if use_fed:
        weight_names += ["ffw", "ffb", "ln2g", "ln2b"]

    layer_block = {
        "wqkv": (1, ZP, 3 * ZP),
        "bqkv": (1, 1, 3 * ZP),
        "ln1g": (1, 1, ZP),
        "ln1b": (1, 1, ZP),
        "ffw": (1, ZP, ZP),
        "ffb": (1, 1, ZP),
        "ln2g": (1, 1, ZP),
        "ln2b": (1, 1, ZP),
    }

    in_specs = [pl.BlockSpec((bt, ZP), lambda i, l: (i, 0)),        # forward_rep block
                pl.BlockSpec((bt, ZP), lambda i, l: (i, 0))]        # backward_rep block
    in_specs += [pl.BlockSpec(layer_block[n], lambda i, l: (l, 0, 0))
                 for n in weight_names]                             # per-layer weight stream
    in_specs += [pl.BlockSpec((SUBLANE, ZP), lambda i, l: (0, 0)),  # hwa (constant)
                 pl.BlockSpec((SUBLANE, ZP), lambda i, l: (0, 0))]  # hwb (constant)

    operands = [f, bwd] + [folded[n] for n in weight_names] + [folded["hwa"], folded["hwb"]]

    vmem_limit = int(min(112 * 2 ** 20,
                         max(20 * 2 ** 20, 1.2 * _estimate_vmem_bytes(bt, ZP, use_fed))))

    kernel = functools.partial(_mixnet_kernel, use_res, use_fed, float(z_dim))

    out = pl.pallas_call(
        kernel,
        out_shape=jax.ShapeDtypeStruct((nb, 1, bt), jnp.float32),
        grid_spec=pltpu.PrefetchScalarGridSpec(
            num_scalar_prefetch=0,
            grid=(nb, L),                                 # batch tiles x layers (innermost)
            in_specs=in_specs,
            out_specs=pl.BlockSpec((1, 1, bt), lambda i, l: (i, 0, 0)),
            scratch_shapes=[pltpu.VMEM((bt, ZP), jnp.float32),      # xf carried across layers
                            pltpu.VMEM((bt, ZP), jnp.float32)],     # xb carried across layers
        ),
        compiler_params=pltpu.CompilerParams(
            dimension_semantics=("parallel", "arbitrary"),
            vmem_limit_bytes=vmem_limit),
    )(*operands)

    return out.reshape(Bp, 1)[:B] + folded["hb"]


# ----------------------- parameter construction -----------------------------

def _orthogonal(key, out_dim, in_dim, gain=1.0):
    # Deterministic orthogonal init (like torch.nn.init.orthogonal_), returns [out, in].
    return jax.nn.initializers.orthogonal(scale=gain)(key, (out_dim, in_dim), jnp.float32)


def init_params(key, z_dim, hidden_dim, n_attn, n_lin):
    ks = iter(jax.random.split(key, 64))
    z4 = 4 * z_dim

    def stack(fn, n):
        return jnp.stack([fn(next(ks)) for _ in range(n)], axis=0)

    p = {}
    # attention blocks (weights stored transposed [in, out]; biases zero; LN gamma=1, beta=0)
    p["wq"] = stack(lambda k: _orthogonal(k, z_dim, z_dim).T, n_attn)      # [L, Z, Z]
    p["wk"] = stack(lambda k: _orthogonal(k, z_dim, z_dim).T, n_attn)
    p["wv"] = stack(lambda k: _orthogonal(k, z_dim, z_dim).T, n_attn)
    p["bq"] = jnp.zeros((n_attn, 1, z_dim), jnp.float32)
    p["bk"] = jnp.zeros((n_attn, 1, z_dim), jnp.float32)
    p["bv"] = jnp.zeros((n_attn, 1, z_dim), jnp.float32)
    p["ln1g"] = jnp.ones((n_attn, 1, z_dim), jnp.float32)
    p["ln1b"] = jnp.zeros((n_attn, 1, z_dim), jnp.float32)
    p["fed1w"] = stack(lambda k: _orthogonal(k, z4, z_dim).T, n_attn)      # [L, Z, 4Z]
    p["fed1b"] = jnp.zeros((n_attn, 1, z4), jnp.float32)
    p["fed2w"] = stack(lambda k: _orthogonal(k, z_dim, z4).T, n_attn)      # [L, 4Z, Z]
    p["fed2b"] = jnp.zeros((n_attn, 1, z_dim), jnp.float32)
    p["ln2g"] = jnp.ones((n_attn, 1, z_dim), jnp.float32)
    p["ln2b"] = jnp.zeros((n_attn, 1, z_dim), jnp.float32)
    # head linears
    p["lin0w"] = _orthogonal(next(ks), hidden_dim, 2 * z_dim).T            # [2Z, H]
    p["lin0b"] = jnp.zeros((1, hidden_dim), jnp.float32)
    p["linw"] = stack(lambda k: _orthogonal(k, hidden_dim, hidden_dim).T, n_lin - 1)
    p["linb"] = jnp.zeros((n_lin - 1, 1, hidden_dim), jnp.float32)
    p["outw"] = _orthogonal(next(ks), 1, hidden_dim).T                     # [H, 1]
    p["outb"] = jnp.zeros((1, 1), jnp.float32)
    return p


# ------------- pure-JAX reference (unfused, mirrors the torch module) --------

def _ln_ref(x, gamma, beta):
    mu = jnp.mean(x, axis=-1, keepdims=True)
    var = jnp.mean(jnp.square(x - mu), axis=-1, keepdims=True)
    return (x - mu) * lax.rsqrt(var + LN_EPS) * gamma + beta


def ref_forward(f, b, p, *, use_res=True, use_fed=True):
    x = jnp.stack([f, b], axis=1)                      # [B, 2, Z]
    z = x.shape[-1]
    for l in range(p["wq"].shape[0]):
        q = x @ p["wq"][l] + p["bq"][l]
        k = x @ p["wk"][l] + p["bk"][l]
        v = x @ p["wv"][l] + p["bv"][l]
        s = jnp.einsum("bij,bkj->bik", q, k) / (z ** 0.5)
        w = jax.nn.softmax(s, axis=-1)
        attn = jnp.einsum("bik,bkj->bij", w, v)
        x = x + attn if use_res else attn
        x = _ln_ref(x, p["ln1g"][l], p["ln1b"][l])
        if use_fed:
            x = x @ p["fed1w"][l] + p["fed1b"][l]
            x = x @ p["fed2w"][l] + p["fed2b"][l]
            x = _ln_ref(x, p["ln2g"][l], p["ln2b"][l])
    h = jnp.concatenate([x[:, 0, :], x[:, 1, :]], axis=-1)
    h = h @ p["lin0w"] + p["lin0b"]
    for j in range(p["linw"].shape[0]):
        h = h @ p["linw"][j] + p["linb"][j]
    return h @ p["outw"] + p["outb"]


if __name__ == "__main__":
    B, Z, H = 8, 32, 32
    N_ATTN, N_LIN = 2, 2

    key = jax.random.PRNGKey(0)
    k_f, k_b, k_p = jax.random.split(key, 3)
    forward_rep = jax.random.normal(k_f, (B, Z), jnp.float32)
    backward_rep = jax.random.normal(k_b, (B, Z), jnp.float32)
    params = init_params(k_p, Z, H, N_ATTN, N_LIN)

    folded = fold_params(params, use_fed=True)         # fold once (load time), reuse per call
    out = mixnet_forward(forward_rep, backward_rep, folded,
                         z_dim=Z, use_res=True, use_fed=True)
    out = jax.block_until_ready(out)

    ref = ref_forward(forward_rep, backward_rep, params, use_res=True, use_fed=True)
    assert out.shape == (B, 1), out.shape
    # Tolerance reflects bf16 MXU operands in the kernel vs an all-f32 reference.
    assert jnp.allclose(out, ref, rtol=1e-1, atol=1e-1), (out, ref)
    print("KERNEL_OK")
</pallas_src>

<mosaic_0001>
module attributes {stable_mosaic.version = 11 : i64} {
  func.func @_mixnet_kernel(%arg0: i32, %arg1: i32, %arg2: memref<8x128xf32, #tpu.memory_space<vmem>>, %arg3: memref<8x128xf32, #tpu.memory_space<vmem>>, %arg4: memref<1x128x384xbf16, #tpu.memory_space<vmem>>, %arg5: memref<1x1x384xf32, #tpu.memory_space<vmem>>, %arg6: memref<1x1x128xf32, #tpu.memory_space<vmem>>, %arg7: memref<1x1x128xf32, #tpu.memory_space<vmem>>, %arg8: memref<1x128x128xbf16, #tpu.memory_space<vmem>>, %arg9: memref<1x1x128xf32, #tpu.memory_space<vmem>>, %arg10: memref<1x1x128xf32, #tpu.memory_space<vmem>>, %arg11: memref<1x1x128xf32, #tpu.memory_space<vmem>>, %arg12: memref<8x128xbf16, #tpu.memory_space<vmem>>, %arg13: memref<8x128xbf16, #tpu.memory_space<vmem>>, %arg14: memref<1x1x8xf32, #tpu.memory_space<vmem>>, %arg15: memref<8x128xf32, #tpu.memory_space<vmem>>, %arg16: memref<8x128xf32, #tpu.memory_space<vmem>>) attributes {dimension_semantics = [#tpu.dimension_semantics<parallel>, #tpu.dimension_semantics<arbitrary>], iteration_bounds = array<i64: 1, 2>, scalar_prefetch = 0 : i64, scratch_operands = 2 : i64, tpu.core_type = #tpu.core_type<tc>, window_params = [{transform_indices = @transform_0, window_bounds = array<i64: 8, 128>}, {transform_indices = @transform_1, window_bounds = array<i64: 8, 128>}, {transform_indices = @transform_2, window_bounds = array<i64: 1, 128, 384>}, {transform_indices = @transform_3, window_bounds = array<i64: 1, 1, 384>}, {transform_indices = @transform_4, window_bounds = array<i64: 1, 1, 128>}, {transform_indices = @transform_5, window_bounds = array<i64: 1, 1, 128>}, {transform_indices = @transform_6, window_bounds = array<i64: 1, 128, 128>}, {transform_indices = @transform_7, window_bounds = array<i64: 1, 1, 128>}, {transform_indices = @transform_8, window_bounds = array<i64: 1, 1, 128>}, {transform_indices = @transform_9, window_bounds = array<i64: 1, 1, 128>}, {pipeline_mode = #tpu.pipeline_mode<synchronous>, transform_indices = @transform_10, window_bounds = array<i64: 8, 128>}, {pipeline_mode = #tpu.pipeline_mode<synchronous>, transform_indices = @transform_11, window_bounds = array<i64: 8, 128>}, {transform_indices = @transform_12, window_bounds = array<i64: 1, 1, 8>}]} {
    %c0_i32 = arith.constant 0 : i32
    %0 = arith.cmpi eq, %arg1, %c0_i32 : i32
    %1 = arith.extui %0 : i1 to i32
    %c0_i32_0 = arith.constant 0 : i32
    %2 = arith.cmpi ne, %1, %c0_i32_0 : i32
    scf.if %2 {
      %c0_67 = arith.constant 0 : index
      %c0_68 = arith.constant 0 : index
      %172 = vector.load %arg2[%c0_67, %c0_68] : memref<8x128xf32, #tpu.memory_space<vmem>>, vector<8x128xf32>
      %c0_69 = arith.constant 0 : index
      %c0_70 = arith.constant 0 : index
      %173 = vector.load %arg15[%c0_69, %c0_70] : memref<8x128xf32, #tpu.memory_space<vmem>>, vector<8x128xf32>
      tpu.vector_store %arg15[%c0_69, %c0_70], %172 {strides = array<i32>} : memref<8x128xf32, #tpu.memory_space<vmem>>, vector<8x128xf32>,
      %c0_71 = arith.constant 0 : index
      %c0_72 = arith.constant 0 : index
      %174 = vector.load %arg3[%c0_71, %c0_72] : memref<8x128xf32, #tpu.memory_space<vmem>>, vector<8x128xf32>
      %c0_73 = arith.constant 0 : index
      %c0_74 = arith.constant 0 : index
      %175 = vector.load %arg16[%c0_73, %c0_74] : memref<8x128xf32, #tpu.memory_space<vmem>>, vector<8x128xf32>
      tpu.vector_store %arg16[%c0_73, %c0_74], %174 {strides = array<i32>} : memref<8x128xf32, #tpu.memory_space<vmem>>, vector<8x128xf32>,
    } else {
    }
    %c0 = arith.constant 0 : index
    %c0_1 = arith.constant 0 : index
    %3 = vector.load %arg15[%c0, %c0_1] : memref<8x128xf32, #tpu.memory_space<vmem>>, vector<8x128xf32>
    %c0_2 = arith.constant 0 : index
    %c0_3 = arith.constant 0 : index
    %4 = vector.load %arg16[%c0_2, %c0_3] : memref<8x128xf32, #tpu.memory_space<vmem>>, vector<8x128xf32>
    %c0_4 = arith.constant 0 : index
    %c0_5 = arith.constant 0 : index
    %c0_6 = arith.constant 0 : index
    %5 = vector.load %arg4[%c0_4, %c0_5, %c0_6] : memref<1x128x384xbf16, #tpu.memory_space<vmem>>, vector<1x128x384xbf16>
    %6 = vector.shape_cast %5 : vector<1x128x384xbf16> to vector<128x384xbf16>
    %c0_7 = arith.constant 0 : index
    %c0_8 = arith.constant 0 : index
    %c0_9 = arith.constant 0 : index
    %7 = vector.load %arg5[%c0_7, %c0_8, %c0_9] : memref<1x1x384xf32, #tpu.memory_space<vmem>>, vector<1x1x384xf32>
    %8 = vector.shape_cast %7 : vector<1x1x384xf32> to vector<1x384xf32>
    %9 = arith.truncf %3 : vector<8x128xf32> to vector<8x128xbf16>
    %cst = arith.constant dense<0.000000e+00> : vector<8x384xf32>
    %10 = tpu.matmul %9, %6, %cst {dimension_numbers = #tpu.dot_dimension_numbers<[1], [0], [0], [1], [0, 0, 1, 1], [], []>} : vector<8x128xbf16>, vector<128x384xbf16>, vector<8x384xf32> -> vector<8x384xf32>
    %11 = vector.broadcast %8 : vector<1x384xf32> to vector<8x384xf32>
    %12 = arith.addf %10, %11 : vector<8x384xf32>
    %13 = arith.truncf %4 : vector<8x128xf32> to vector<8x128xbf16>
    %cst_10 = arith.constant dense<0.000000e+00> : vector<8x384xf32>
    %14 = tpu.matmul %13, %6, %cst_10 {dimension_numbers = #tpu.dot_dimension_numbers<[1], [0], [0], [1], [0, 0, 1, 1], [], []>} : vector<8x128xbf16>, vector<128x384xbf16>, vector<8x384xf32> -> vector<8x384xf32>
    %15 = vector.broadcast %8 : vector<1x384xf32> to vector<8x384xf32>
    %16 = arith.addf %14, %15 : vector<8x384xf32>
    %17 = vector.extract_strided_slice %12 {offsets = [0, 0], sizes = [8, 128], strides = [1, 1]} : vector<8x384xf32> to vector<8x128xf32>
    %18 = vector.extract_strided_slice %12 {offsets = [0, 256], sizes = [8, 128], strides = [1, 1]} : vector<8x384xf32> to vector<8x128xf32>
    %19 = vector.extract_strided_slice %16 {offsets = [0, 0], sizes = [8, 128], strides = [1, 1]} : vector<8x384xf32> to vector<8x128xf32>
    %20 = vector.extract_strided_slice %16 {offsets = [0, 256], sizes = [8, 128], strides = [1, 1]} : vector<8x384xf32> to vector<8x128xf32>
    %21 = vector.extract_strided_slice %16 {offsets = [0, 128], sizes = [8, 128], strides = [1, 1]} : vector<8x384xf32> to vector<8x128xf32>
    %22 = vector.extract_strided_slice %12 {offsets = [0, 128], sizes = [8, 128], strides = [1, 1]} : vector<8x384xf32> to vector<8x128xf32>
    %23 = arith.subf %21, %22 : vector<8x128xf32>
    %24 = arith.subf %20, %18 : vector<8x128xf32>
    %25 = arith.mulf %17, %23 : vector<8x128xf32>
    %cst_11 = arith.constant dense<0.000000e+00> : vector<8xf32>
    %26 = vector.multi_reduction <add>, %25, %cst_11 [1] : vector<8x128xf32> to vector<8xf32>
    %27 = vector.shape_cast %26 : vector<8xf32> to vector<8x1xf32>
    %cst_12 = arith.constant 0.176776692 : f32
    %28 = vector.broadcast %cst_12 : f32 to vector<8x1xf32>
    %29 = arith.mulf %27, %28 : vector<8x1xf32>
    %30 = arith.mulf %19, %23 : vector<8x128xf32>
    %cst_13 = arith.constant dense<0.000000e+00> : vector<8xf32>
    %31 = vector.multi_reduction <add>, %30, %cst_13 [1] : vector<8x128xf32> to vector<8xf32>
    %32 = vector.shape_cast %31 : vector<8xf32> to vector<8x1xf32>
    %cst_14 = arith.constant 0.176776692 : f32
    %33 = vector.broadcast %cst_14 : f32 to vector<8x1xf32>
    %34 = arith.mulf %32, %33 : vector<8x1xf32>
    %cst_15 = arith.constant 5.000000e-01 : f32
    %35 = vector.broadcast %cst_15 : f32 to vector<8x1xf32>
    %36 = arith.mulf %35, %29 : vector<8x1xf32>
    %37 = math.tanh %36 : vector<8x1xf32>
    %cst_16 = arith.constant 1.000000e+00 : f32
    %38 = vector.broadcast %cst_16 : f32 to vector<8x1xf32>
    %39 = arith.addf %37, %38 : vector<8x1xf32>
    %cst_17 = arith.constant 5.000000e-01 : f32
    %40 = vector.broadcast %cst_17 : f32 to vector<8x1xf32>
    %41 = arith.mulf %40, %39 : vector<8x1xf32>
    %42 = vector.broadcast %41 : vector<8x1xf32> to vector<8x128xf32>
    %43 = arith.mulf %42, %24 : vector<8x128xf32>
    %44 = arith.addf %18, %43 : vector<8x128xf32>
    %cst_18 = arith.constant 0.000000e+00 : f32
    %45 = vector.broadcast %cst_18 : f32 to vector<8x1xf32>
    %46 = arith.subf %45, %34 : vector<8x1xf32>
    %cst_19 = arith.constant 5.000000e-01 : f32
    %47 = vector.broadcast %cst_19 : f32 to vector<8x1xf32>
    %48 = arith.mulf %47, %46 : vector<8x1xf32>
    %49 = math.tanh %48 : vector<8x1xf32>
    %cst_20 = arith.constant 1.000000e+00 : f32
    %50 = vector.broadcast %cst_20 : f32 to vector<8x1xf32>
    %51 = arith.addf %49, %50 : vector<8x1xf32>
    %cst_21 = arith.constant 5.000000e-01 : f32
    %52 = vector.broadcast %cst_21 : f32 to vector<8x1xf32>
    %53 = arith.mulf %52, %51 : vector<8x1xf32>
    %54 = vector.broadcast %53 : vector<8x1xf32> to vector<8x128xf32>
    %55 = arith.mulf %54, %24 : vector<8x128xf32>
    %56 = arith.subf %20, %55 : vector<8x128xf32>
    %57 = arith.addf %3, %44 : vector<8x128xf32>
    %58 = arith.addf %4, %56 : vector<8x128xf32>
    %c0_22 = arith.constant 0 : index
    %c0_23 = arith.constant 0 : index
    %c0_24 = arith.constant 0 : index
    %59 = vector.load %arg6[%c0_22, %c0_23, %c0_24] : memref<1x1x128xf32, #tpu.memory_space<vmem>>, vector<1x1x128xf32>
    %60 = vector.shape_cast %59 : vector<1x1x128xf32> to vector<1x128xf32>
    %c0_25 = arith.constant 0 : index
    %c0_26 = arith.constant 0 : index
    %c0_27 = arith.constant 0 : index
    %61 = vector.load %arg7[%c0_25, %c0_26, %c0_27] : memref<1x1x128xf32, #tpu.memory_space<vmem>>, vector<1x1x128xf32>
    %62 = vector.shape_cast %61 : vector<1x1x128xf32> to vector<1x128xf32>
    %cst_28 = arith.constant dense<0.000000e+00> : vector<8xf32>
    %63 = vector.multi_reduction <add>, %57, %cst_28 [1] : vector<8x128xf32> to vector<8xf32>
    %64 = vector.shape_cast %63 : vector<8xf32> to vector<8x1xf32>
    %cst_29 = arith.constant 3.125000e-02 : f32
    %65 = vector.broadcast %cst_29 : f32 to vector<8x1xf32>
    %66 = arith.mulf %64, %65 : vector<8x1xf32>
    %67 = arith.mulf %57, %57 : vector<8x128xf32>
    %cst_30 = arith.constant dense<0.000000e+00> : vector<8xf32>
    %68 = vector.multi_reduction <add>, %67, %cst_30 [1] : vector<8x128xf32> to vector<8xf32>
    %69 = vector.shape_cast %68 : vector<8xf32> to vector<8x1xf32>
    %cst_31 = arith.constant 3.125000e-02 : f32
    %70 = vector.broadcast %cst_31 : f32 to vector<8x1xf32>
    %71 = arith.mulf %69, %70 : vector<8x1xf32>
    %72 = arith.mulf %66, %66 : vector<8x1xf32>
    %73 = arith.subf %71, %72 : vector<8x1xf32>
    %74 = vector.broadcast %66 : vector<8x1xf32> to vector<8x128xf32>
    %75 = arith.subf %57, %74 : vector<8x128xf32>
    %cst_32 = arith.constant 9.99999974E-6 : f32
    %76 = vector.broadcast %cst_32 : f32 to vector<8x1xf32>
    %77 = arith.addf %73, %76 : vector<8x1xf32>
    %78 = math.rsqrt %77 : vector<8x1xf32>
    %79 = vector.broadcast %78 : vector<8x1xf32> to vector<8x128xf32>
    %80 = arith.mulf %75, %79 : vector<8x128xf32>
    %81 = vector.broadcast %60 : vector<1x128xf32> to vector<8x128xf32>
    %82 = arith.mulf %80, %81 : vector<8x128xf32>
    %83 = vector.broadcast %62 : vector<1x128xf32> to vector<8x128xf32>
    %84 = arith.addf %82, %83 : vector<8x128xf32>
    %cst_33 = arith.constant dense<0.000000e+00> : vector<8xf32>
    %85 = vector.multi_reduction <add>, %58, %cst_33 [1] : vector<8x128xf32> to vector<8xf32>
    %86 = vector.shape_cast %85 : vector<8xf32> to vector<8x1xf32>
    %cst_34 = arith.constant 3.125000e-02 : f32
    %87 = vector.broadcast %cst_34 : f32 to vector<8x1xf32>
    %88 = arith.mulf %86, %87 : vector<8x1xf32>
    %89 = arith.mulf %58, %58 : vector<8x128xf32>
    %cst_35 = arith.constant dense<0.000000e+00> : vector<8xf32>
    %90 = vector.multi_reduction <add>, %89, %cst_35 [1] : vector<8x128xf32> to vector<8xf32>
    %91 = vector.shape_cast %90 : vector<8xf32> to vector<8x1xf32>
    %cst_36 = arith.constant 3.125000e-02 : f32
    %92 = vector.broadcast %cst_36 : f32 to vector<8x1xf32>
    %93 = arith.mulf %91, %92 : vector<8x1xf32>
    %94 = arith.mulf %88, %88 : vector<8x1xf32>
    %95 = arith.subf %93, %94 : vector<8x1xf32>
    %96 = vector.broadcast %88 : vector<8x1xf32> to vector<8x128xf32>
    %97 = arith.subf %58, %96 : vector<8x128xf32>
    %cst_37 = arith.constant 9.99999974E-6 : f32
    %98 = vector.broadcast %cst_37 : f32 to vector<8x1xf32>
    %99 = arith.addf %95, %98 : vector<8x1xf32>
    %100 = math.rsqrt %99 : vector<8x1xf32>
    %101 = vector.broadcast %100 : vector<8x1xf32> to vector<8x128xf32>
    %102 = arith.mulf %97, %101 : vector<8x128xf32>
    %103 = vector.broadcast %60 : vector<1x128xf32> to vector<8x128xf32>
    %104 = arith.mulf %102, %103 : vector<8x128xf32>
    %105 = vector.broadcast %62 : vector<1x128xf32> to vector<8x128xf32>
    %106 = arith.addf %104, %105 : vector<8x128xf32>
    %c0_38 = arith.constant 0 : index
    %c0_39 = arith.constant 0 : index
    %c0_40 = arith.constant 0 : index
    %107 = vector.load %arg8[%c0_38, %c0_39, %c0_40] : memref<1x128x128xbf16, #tpu.memory_space<vmem>>, vector<1x128x128xbf16>
    %108 = vector.shape_cast %107 : vector<1x128x128xbf16> to vector<128x128xbf16>
    %c0_41 = arith.constant 0 : index
    %c0_42 = arith.constant 0 : index
    %c0_43 = arith.constant 0 : index
    %109 = vector.load %arg9[%c0_41, %c0_42, %c0_43] : memref<1x1x128xf32, #tpu.memory_space<vmem>>, vector<1x1x128xf32>
    %110 = vector.shape_cast %109 : vector<1x1x128xf32> to vector<1x128xf32>
    %111 = arith.truncf %84 : vector<8x128xf32> to vector<8x128xbf16>
    %cst_44 = arith.constant dense<0.000000e+00> : vector<8x128xf32>
    %112 = tpu.matmul %111, %108, %cst_44 {dimension_numbers = #tpu.dot_dimension_numbers<[1], [0], [0], [1], [0, 0, 1, 1], [], []>} : vector<8x128xbf16>, vector<128x128xbf16>, vector<8x128xf32> -> vector<8x128xf32>
    %113 = vector.broadcast %110 : vector<1x128xf32> to vector<8x128xf32>
    %114 = arith.addf %112, %113 : vector<8x128xf32>
    %115 = arith.truncf %106 : vector<8x128xf32> to vector<8x128xbf16>
    %cst_45 = arith.constant dense<0.000000e+00> : vector<8x128xf32>
    %116 = tpu.matmul %115, %108, %cst_45 {dimension_numbers = #tpu.dot_dimension_numbers<[1], [0], [0], [1], [0, 0, 1, 1], [], []>} : vector<8x128xbf16>, vector<128x128xbf16>, vector<8x128xf32> -> vector<8x128xf32>
    %117 = vector.broadcast %110 : vector<1x128xf32> to vector<8x128xf32>
    %118 = arith.addf %116, %117 : vector<8x128xf32>
    %c0_46 = arith.constant 0 : index
    %c0_47 = arith.constant 0 : index
    %c0_48 = arith.constant 0 : index
    %119 = vector.load %arg10[%c0_46, %c0_47, %c0_48] : memref<1x1x128xf32, #tpu.memory_space<vmem>>, vector<1x1x128xf32>
    %120 = vector.shape_cast %119 : vector<1x1x128xf32> to vector<1x128xf32>
    %c0_49 = arith.constant 0 : index
    %c0_50 = arith.constant 0 : index
    %c0_51 = arith.constant 0 : index
    %121 = vector.load %arg11[%c0_49, %c0_50, %c0_51] : memref<1x1x128xf32, #tpu.memory_space<vmem>>, vector<1x1x128xf32>
    %122 = vector.shape_cast %121 : vector<1x1x128xf32> to vector<1x128xf32>
    %cst_52 = arith.constant dense<0.000000e+00> : vector<8xf32>
    %123 = vector.multi_reduction <add>, %114, %cst_52 [1] : vector<8x128xf32> to vector<8xf32>
    %124 = vector.shape_cast %123 : vector<8xf32> to vector<8x1xf32>
    %cst_53 = arith.constant 3.125000e-02 : f32
    %125 = vector.broadcast %cst_53 : f32 to vector<8x1xf32>
    %126 = arith.mulf %124, %125 : vector<8x1xf32>
    %127 = arith.mulf %114, %114 : vector<8x128xf32>
    %cst_54 = arith.constant dense<0.000000e+00> : vector<8xf32>
    %128 = vector.multi_reduction <add>, %127, %cst_54 [1] : vector<8x128xf32> to vector<8xf32>
    %129 = vector.shape_cast %128 : vector<8xf32> to vector<8x1xf32>
    %cst_55 = arith.constant 3.125000e-02 : f32
    %130 = vector.broadcast %cst_55 : f32 to vector<8x1xf32>
    %131 = arith.mulf %129, %130 : vector<8x1xf32>
    %132 = arith.mulf %126, %126 : vector<8x1xf32>
    %133 = arith.subf %131, %132 : vector<8x1xf32>
    %134 = vector.broadcast %126 : vector<8x1xf32> to vector<8x128xf32>
    %135 = arith.subf %114, %134 : vector<8x128xf32>
    %cst_56 = arith.constant 9.99999974E-6 : f32
    %136 = vector.broadcast %cst_56 : f32 to vector<8x1xf32>
    %137 = arith.addf %133, %136 : vector<8x1xf32>
    %138 = math.rsqrt %137 : vector<8x1xf32>
    %139 = vector.broadcast %138 : vector<8x1xf32> to vector<8x128xf32>
    %140 = arith.mulf %135, %139 : vector<8x128xf32>
    %141 = vector.broadcast %120 : vector<1x128xf32> to vector<8x128xf32>
    %142 = arith.mulf %140, %141 : vector<8x128xf32>
    %143 = vector.broadcast %122 : vector<1x128xf32> to vector<8x128xf32>
    %144 = arith.addf %142, %143 : vector<8x128xf32>
    %cst_57 = arith.constant dense<0.000000e+00> : vector<8xf32>
    %145 = vector.multi_reduction <add>, %118, %cst_57 [1] : vector<8x128xf32> to vector<8xf32>
    %146 = vector.shape_cast %145 : vector<8xf32> to vector<8x1xf32>
    %cst_58 = arith.constant 3.125000e-02 : f32
    %147 = vector.broadcast %cst_58 : f32 to vector<8x1xf32>
    %148 = arith.mulf %146, %147 : vector<8x1xf32>
    %149 = arith.mulf %118, %118 : vector<8x128xf32>
    %cst_59 = arith.constant dense<0.000000e+00> : vector<8xf32>
    %150 = vector.multi_reduction <add>, %149, %cst_59 [1] : vector<8x128xf32> to vector<8xf32>
    %151 = vector.shape_cast %150 : vector<8xf32> to vector<8x1xf32>
    %cst_60 = arith.constant 3.125000e-02 : f32
    %152 = vector.broadcast %cst_60 : f32 to vector<8x1xf32>
    %153 = arith.mulf %151, %152 : vector<8x1xf32>
    %154 = arith.mulf %148, %148 : vector<8x1xf32>
    %155 = arith.subf %153, %154 : vector<8x1xf32>
    %156 = vector.broadcast %148 : vector<8x1xf32> to vector<8x128xf32>
    %157 = arith.subf %118, %156 : vector<8x128xf32>
    %cst_61 = arith.constant 9.99999974E-6 : f32
    %158 = vector.broadcast %cst_61 : f32 to vector<8x1xf32>
    %159 = arith.addf %155, %158 : vector<8x1xf32>
    %160 = math.rsqrt %159 : vector<8x1xf32>
    %161 = vector.broadcast %160 : vector<8x1xf32> to vector<8x128xf32>
    %162 = arith.mulf %157, %161 : vector<8x128xf32>
    %163 = vector.broadcast %120 : vector<1x128xf32> to vector<8x128xf32>
    %164 = arith.mulf %162, %163 : vector<8x128xf32>
    %165 = vector.broadcast %122 : vector<1x128xf32> to vector<8x128xf32>
    %166 = arith.addf %164, %165 : vector<8x128xf32>
    %c0_62 = arith.constant 0 : index
    %c0_63 = arith.constant 0 : index
    %167 = vector.load %arg15[%c0_62, %c0_63] : memref<8x128xf32, #tpu.memory_space<vmem>>, vector<8x128xf32>
    tpu.vector_store %arg15[%c0_62, %c0_63], %144 {strides = array<i32>} : memref<8x128xf32, #tpu.memory_space<vmem>>, vector<8x128xf32>,
    %c0_64 = arith.constant 0 : index
    %c0_65 = arith.constant 0 : index
    %168 = vector.load %arg16[%c0_64, %c0_65] : memref<8x128xf32, #tpu.memory_space<vmem>>, vector<8x128xf32>
    tpu.vector_store %arg16[%c0_64, %c0_65], %166 {strides = array<i32>} : memref<8x128xf32, #tpu.memory_space<vmem>>, vector<8x128xf32>,
    %c1_i32 = arith.constant 1 : i32
    %169 = arith.cmpi eq, %arg1, %c1_i32 : i32
    %170 = arith.extui %169 : i1 to i32
    %c0_i32_66 = arith.constant 0 : i32
    %171 = arith.cmpi ne, %170, %c0_i32_66 : i32
    scf.if %171 {
      %c0_67 = arith.constant 0 : index
      %c0_68 = arith.constant 0 : index
      %172 = vector.load %arg12[%c0_67, %c0_68] : memref<8x128xbf16, #tpu.memory_space<vmem>>, vector<8x128xbf16>
      %173 = arith.truncf %144 : vector<8x128xf32> to vector<8x128xbf16>
      %cst_69 = arith.constant dense<0.000000e+00> : vector<8x8xf32>
      %174 = tpu.matmul %172, %173, %cst_69 {dimension_numbers = #tpu.dot_dimension_numbers<[1], [1], [0], [0], [0, 0, 1, 0], [], []>} : vector<8x128xbf16>, vector<8x128xbf16>, vector<8x8xf32> -> vector<8x8xf32>
      %c0_70 = arith.constant 0 : index
      %c0_71 = arith.constant 0 : index
      %175 = vector.load %arg13[%c0_70, %c0_71] : memref<8x128xbf16, #tpu.memory_space<vmem>>, vector<8x128xbf16>
      %176 = arith.truncf %166 : vector<8x128xf32> to vector<8x128xbf16>
      %cst_72 = arith.constant dense<0.000000e+00> : vector<8x8xf32>
      %177 = tpu.matmul %175, %176, %cst_72 {dimension_numbers = #tpu.dot_dimension_numbers<[1], [1], [0], [0], [0, 0, 1, 0], [], []>} : vector<8x128xbf16>, vector<8x128xbf16>, vector<8x8xf32> -> vector<8x8xf32>
      %178 = arith.addf %174, %177 : vector<8x8xf32>
      %179 = vector.extract_strided_slice %178 {offsets = [0, 0], sizes = [1, 8], strides = [1, 1]} : vector<8x8xf32> to vector<1x8xf32>
      %c0_73 = arith.constant 0 : index
      %c0_74 = arith.constant 0 : index
      %c0_75 = arith.constant 0 : index
      %180 = vector.load %arg14[%c0_73, %c0_74, %c0_75] : memref<1x1x8xf32, #tpu.memory_space<vmem>>, vector<1x1x8xf32>
      %181 = vector.shape_cast %180 : vector<1x1x8xf32> to vector<1x8xf32>
      %182 = vector.shape_cast %179 : vector<1x8xf32> to vector<1x1x8xf32>
      tpu.vector_store %arg14[%c0_73, %c0_74, %c0_75], %182 {strides = array<i32>} : memref<1x1x8xf32, #tpu.memory_space<vmem>>, vector<1x1x8xf32>,
    } else {
    }
    return
  }
  func.func @transform_0(%arg0: i32, %arg1: i32) -> (i32, i32) {
    %c0_i32 = arith.constant 0 : i32
    %c0_i32_0 = arith.constant 0 : i32
    return %arg0, %c0_i32 : i32, i32
  }
  func.func @transform_1(%arg0: i32, %arg1: i32) -> (i32, i32) {
    %c0_i32 = arith.constant 0 : i32
    %c0_i32_0 = arith.constant 0 : i32
    return %arg0, %c0_i32 : i32, i32
  }
  func.func @transform_2(%arg0: i32, %arg1: i32) -> (i32, i32, i32) {
    %c0_i32 = arith.constant 0 : i32
    %c0_i32_0 = arith.constant 0 : i32
    %c0_i32_1 = arith.constant 0 : i32
    return %arg1, %c0_i32, %c0_i32_0 : i32, i32, i32
  }
  func.func @transform_3(%arg0: i32, %arg1: i32) -> (i32, i32, i32) {
    %c0_i32 = arith.constant 0 : i32
    %c0_i32_0 = arith.constant 0 : i32
    %c0_i32_1 = arith.constant 0 : i32
    return %arg1, %c0_i32, %c0_i32_0 : i32, i32, i32
  }
  func.func @transform_4(%arg0: i32, %arg1: i32) -> (i32, i32, i32) {
    %c0_i32 = arith.constant 0 : i32
    %c0_i32_0 = arith.constant 0 : i32
    %c0_i32_1 = arith.constant 0 : i32
    return %arg1, %c0_i32, %c0_i32_0 : i32, i32, i32
  }
  func.func @transform_5(%arg0: i32, %arg1: i32) -> (i32, i32, i32) {
    %c0_i32 = arith.constant 0 : i32
    %c0_i32_0 = arith.constant 0 : i32
    %c0_i32_1 = arith.constant 0 : i32
    return %arg1, %c0_i32, %c0_i32_0 : i32, i32, i32
  }
  func.func @transform_6(%arg0: i32, %arg1: i32) -> (i32, i32, i32) {
    %c0_i32 = arith.constant 0 : i32
    %c0_i32_0 = arith.constant 0 : i32
    %c0_i32_1 = arith.constant 0 : i32
    return %arg1, %c0_i32, %c0_i32_0 : i32, i32, i32
  }
  func.func @transform_7(%arg0: i32, %arg1: i32) -> (i32, i32, i32) {
    %c0_i32 = arith.constant 0 : i32
    %c0_i32_0 = arith.constant 0 : i32
    %c0_i32_1 = arith.constant 0 : i32
    return %arg1, %c0_i32, %c0_i32_0 : i32, i32, i32
  }
  func.func @transform_8(%arg0: i32, %arg1: i32) -> (i32, i32, i32) {
    %c0_i32 = arith.constant 0 : i32
    %c0_i32_0 = arith.constant 0 : i32
    %c0_i32_1 = arith.constant 0 : i32
    return %arg1, %c0_i32, %c0_i32_0 : i32, i32, i32
  }
  func.func @transform_9(%arg0: i32, %arg1: i32) -> (i32, i32, i32) {
    %c0_i32 = arith.constant 0 : i32
    %c0_i32_0 = arith.constant 0 : i32
    %c0_i32_1 = arith.constant 0 : i32
    return %arg1, %c0_i32, %c0_i32_0 : i32, i32, i32
  }
  func.func @transform_10(%arg0: i32, %arg1: i32) -> (i32, i32) {
    %c0_i32 = arith.constant 0 : i32
    %c0_i32_0 = arith.constant 0 : i32
    %c0_i32_1 = arith.constant 0 : i32
    return %c0_i32, %c0_i32_0 : i32, i32
  }
  func.func @transform_11(%arg0: i32, %arg1: i32) -> (i32, i32) {
    %c0_i32 = arith.constant 0 : i32
    %c0_i32_0 = arith.constant 0 : i32
    %c0_i32_1 = arith.constant 0 : i32
    return %c0_i32, %c0_i32_0 : i32, i32
  }
  func.func @transform_12(%arg0: i32, %arg1: i32) -> (i32, i32, i32) {
    %c0_i32 = arith.constant 0 : i32
    %c0_i32_0 = arith.constant 0 : i32
    %c0_i32_1 = arith.constant 0 : i32
    return %arg0, %c0_i32, %c0_i32_0 : i32, i32, i32
  }
}

</mosaic_0001>

<bundles_post_ra>
// kernel: tpu_custom_call.1
= control target key start
LH: loop header
LB: loop body
LE: loop exit
PB: predicated region body
PF: predicated region fallthrough
CT: control target
= control target key end

     0   :  { %s2562_s0 = inlined_call_operand.hbm [shape: f32[8,128], index: 0, kind: input, shape index: {}]   ;;  %s2563_s1 = inlined_call_operand.hbm [shape: f32[8,128], index: 1, kind: input, shape index: {}]   ;;  %s2564_s2 = inlined_call_operand.hbm [shape: bf16[2,128,384], index: 2, kind: input, shape index: {}]   ;;  %s2565_s3 = inlined_call_operand.hbm [shape: f32[2,1,384], index: 3, kind: input, shape index: {}]   ;;  %s2566_s4 = inlined_call_operand.hbm [shape: f32[2,1,128], index: 4, kind: input, shape index: {}]   ;;  %s2567_s5 = inlined_call_operand.hbm [shape: f32[2,1,128], index: 5, kind: input, shape index: {}]   ;;  %s2568_s6 = inlined_call_operand.hbm [shape: bf16[2,128,128], index: 6, kind: input, shape index: {}]   ;;  %s2569_s7 = inlined_call_operand.hbm [shape: f32[2,1,128], index: 7, kind: input, shape index: {}]   ;;  %s2570_s8 = inlined_call_operand.hbm [shape: f32[2,1,128], index: 8, kind: input, shape index: {}]   ;;  %s2571_s9 = inlined_call_operand.hbm [shape: f32[2,1,128], index: 9, kind: input, shape index: {}]   ;;  %s2572_s10 = inlined_call_operand.vmem [shape: bf16[8,128], index: 10, kind: input, shape index: {}]   ;;  %s2573_s11 = inlined_call_operand.vmem [shape: bf16[8,128], index: 11, kind: input, shape index: {}]   ;;  %s2574_s12 = inlined_call_operand.hbm [shape: f32[1,1,8], index: 12, kind: output, shape index: {}]  }
   0x1   :  { %2580 = sst [smem:[#allocation28_spill]] %s2562_s0 }
   0x2   :  { %2581 = sst [smem:[#allocation29_spill]] %s2564_s2 }
   0x3   :  { %2582 = sst [smem:[#allocation30_spill]] %s2572_s10 }
   0x4   :  { %2583 = sst [smem:[#allocation31_spill]] %s2573_s11 }
   0x5   :  { %2584 = sst [smem:[#allocation32_spill]] %s2574_s12 }
   0x6   :  { %17 = vsyncpa [#allocation5], 0 }
   0x7   :  { %18 = vsyncpa [#allocation8], 0 }
   0x8   :  { %19 = vsyncpa [#allocation6], 0  ;;  %s2247_s21 = smov 0   ;;  %s2249_s22 = smov 0  }
   0x9   :  { %s2251_s23 = smov 0   ;;  %s2253_s24 = smov 0  }
   0xa   :  { %s2255_s25 = smov 0   ;;  %s2257_s26 = smov 0  }
   0xb LB: > { %2585 = sst [smem:[#allocation22_spill]] %s2161_s23  ;;  %s2276_s27 = sadd.s32 4294967295, %s2173_s26   ;;  %s2173_s26 = sphi %s2257_s26, %s25_s26   ;;  %s2169_s25 = sphi %s2255_s25, %s2611_s25   ;;  %s2165_s24 = sphi %s2253_s24, %s2610_s24   ;;  %s2161_s23 = sphi %s2251_s23, %s2606_s23   ;;  %s2157_s22 = sphi %s2249_s22, %s2609_s22   ;;  %s2153_s21 = sphi %s2247_s21, %s2608_s21  }
   0xc   : > { %2586 = sst [smem:[#allocation23_spill]] %s2165_s24  ;;  %s34_s28 = sadd.s32 1, %s2169_s25 }
   0xd   : > { %2587 = sst [smem:[#allocation24_spill]] %s2173_s26  ;;  %p35_p0 = scmp.ge.s32.totalorder %s34_s28, 2 }
   0xe   : > { %s96_s29 = sadd.s32 1, %s2161_s23  ;;  %p103_p1 = scmp.ne.s32.totalorder %s2161_s23, %s2157_s22 }
   0xf   : > { %p104_p2 = scmp.eq.s32.totalorder %s2173_s26, 0  ;;  %s2613_s28 = smov (%p35_p0, %s34_s28), 0 }
  0x10   : > { %2588 = sst [smem:[#allocation25_spill]] %s2613_s28  ;;  %p109_p4 = scmp.ne.s32.totalorder %s2157_s22, %s2153_s21 }
  0x11   : > { %p2285_p3 = por %p104_p2, %p103_p1  ;;  %s93_s13 = ssub.s32 %s2169_s25, %s2613_s28 }
  0x12   : > { %p110_p5 = scmp.eq.s32.totalorder %s2276_s27, 0  ;;  %p94_p6 = scmp.eq.s32.totalorder %s93_s13, 0 }
  0x13   : > { %p1459_p7 = scmp.ge.s32.totalorder %s2173_s26, 1  ;;  %p370_p9 = scmp.lt.s32.totalorder %s2173_s26, 3 }
  0x14   : > { %p2296_p8 = por %p110_p5, %p109_p4  ;;  %s2594_s0 = sld [smem:[#allocation28_spill]] }
  0x15   : > { %s2302_s15 = scalar_select %p94_p6, %s2161_s23, %s96_s29  }
  0x16   : > { %s2590_s14 = scalar_select %p2296_p8, 1, 0 }
  0x17   : > { %2592 = sst [smem:[#allocation27_spill]] %s2302_s15  ;;  %p2304_p10 = pnand %p1459_p7, %p370_p9 }
  0x18   : > { %2591 = sst [smem:[#allocation26_spill]] %s2590_s14  ;;  %s2175_s20 = smov [#allocation4]  }
  0x19   : > { %p1672_p11 = pneg %p2304_p10  ;;  %s386_s21 = sshll.u32 %s2175_s20, 4  ;;  %s387_s21 = int_to_ptr.vmem [resolvable:$true] %s386_s21 }
  0x1a   : > { %s384_s19 = sshll.u32 %s2594_s0, 4  ;;  %p1706_p13 = scmp.lt.s32.totalorder %s2173_s26, 2  ;;  %s385_s19 = int_to_ptr.hbm [resolvable:$true] %s384_s19 }
  0x1b   : > { %p2315_p12 = pnand %p1672_p11, %p110_p5  ;;  %s2321_s29 = sand.u32 1, %s2161_s23  }
  0x1c   : > { %s417_s17 = sand.u32 1, %s2173_s26   ;;  %p2328_p0 = pnand %p1706_p13, %p2285_p3 }
  0x1d   : > { %1675 = dma.hbm_to_vmem [thread:$0]  (!%p2315_p12), %s385_s19, 128, %s387_s21, [#allocation5]  }
  0x1e   : > { %s1638_s20 = smul.u32 192, %s2321_s29  ;;  %s2597_s2 = sld [smem:[#allocation29_spill]] }
  0x1f   : > { %s1639_s0 = smul.u32 192, %s2169_s25  ;;  %s2338_s30 = scalar_lea.sflag [#allocation5], %s417_s17 }
  0x20   : > { %s421_s23 = scalar_lea.vmem [#allocation9], %s1638_s20  ;;  %s1640_s19 = smul.u32 3, %s2321_s29 }
  0x21   : > { %s429_s10 = sshll.u32 %s421_s23, 4  ;;  %s2176_s21 = smov 192   ;;  %s430_s10 = int_to_ptr.vmem [resolvable:$true] %s429_s10 }
  0x22   : > { %s2177_s26 = smov 12   ;;  %s443_s23 = scalar_lea.vmem [#allocation10], %s1640_s19 }
  0x23   : > { %s464_s14 = scalar_lea.hbm %s2566_s4, %s2169_s25  ;;  %s2179_s19 = smov 4  }
  0x24   : > { %s426_s12 = scalar_lea.hbm %s2597_s2, %s1639_s0  ;;  %s1641_s0 = smul.u32 3, %s2169_s25 }
  0x25   : > { %s427_s11 = sshll.u32 %s426_s12, 4  ;;  %s451_s12 = sshll.u32 %s443_s23, 4  ;;  %s428_s11 = int_to_ptr.hbm [resolvable:$true] %s427_s11  ;;  %s452_s12 = int_to_ptr.vmem [resolvable:$true] %s451_s12 }
  0x26   : > { %1682 = dma.hbm_to_vmem [thread:$0]  (!%p2328_p0), %s428_s11, 3072, %s430_s10, %s2338_s30, %s2176_s21, %s2176_s21, %s2177_s26  }
  0x27   : > { %s447_s20 = scalar_lea.hbm %s2565_s3, %s1641_s0  ;;  %s466_s10 = sshll.u32 %s464_s14, 4  ;;  %s467_s10 = int_to_ptr.hbm [resolvable:$true] %s466_s10 }
  0x28   : > { %s449_s17 = sshll.u32 %s447_s20, 4  ;;  %s461_s11 = scalar_lea.vmem [#allocation11], %s2321_s29  ;;  %s450_s17 = int_to_ptr.hbm [resolvable:$true] %s449_s17 }
  0x29   : > { %1685 = dma.hbm_to_vmem [thread:$0]  (!%p2328_p0), %s450_s17, 48, %s452_s12, %s2338_s30  }
  0x2a   : > { %s468_s26 = sshll.u32 %s461_s11, 4  ;;  %s481_s0 = scalar_lea.hbm %s2567_s5, %s2169_s25  ;;  %s469_s26 = int_to_ptr.vmem [resolvable:$true] %s468_s26 }
  0x2b   : > { %1688 = dma.hbm_to_vmem [thread:$0]  (!%p2328_p0), %s467_s10, 16, %s469_s26, %s2338_s30  }
  0x2c   : > { %s478_s2 = scalar_lea.vmem [#allocation12], %s2321_s29  ;;  %s483_s23 = sshll.u32 %s481_s0, 4  ;;  %s484_s23 = int_to_ptr.hbm [resolvable:$true] %s483_s23 }
  0x2d   : > { %s485_s24 = sshll.u32 %s478_s2, 4  ;;  %s1464_s14 = sshll.u32 %s2321_s29, 6  ;;  %s486_s24 = int_to_ptr.vmem [resolvable:$true] %s485_s24 }
  0x2e   : > { %1691 = dma.hbm_to_vmem [thread:$0]  (!%p2328_p0), %s484_s23, 16, %s486_s24, %s2338_s30  }
  0x2f   : > { %s1605_s12 = sshll.u32 %s2169_s25, 6  ;;  %s496_s17 = scalar_lea.vmem [#allocation13], %s1464_s14 }
  0x30   : > { %s501_s20 = scalar_lea.hbm %s2568_s6, %s1605_s12  ;;  %s504_s10 = sshll.u32 %s496_s17, 4  ;;  %s505_s10 = int_to_ptr.vmem [resolvable:$true] %s504_s10 }
  0x31   : > { %s502_s11 = sshll.u32 %s501_s20, 4  ;;  %s2178_s26 = smov 64   ;;  %s503_s11 = int_to_ptr.hbm [resolvable:$true] %s502_s11 }
  0x32   : > { %1694 = dma.hbm_to_vmem [thread:$0]  (!%p2328_p0), %s503_s11, 1024, %s505_s10, %s2338_s30, %s2178_s26, %s2178_s26, %s2179_s19  }
  0x33   : > { %s520_s2 = scalar_lea.hbm %s2569_s7, %s2169_s25  ;;  %s517_s24 = scalar_lea.vmem [#allocation14], %s2321_s29 }
  0x34   : > { %s524_s23 = sshll.u32 %s517_s24, 4  ;;  %s522_s12 = sshll.u32 %s520_s2, 4  ;;  %s525_s23 = int_to_ptr.vmem [resolvable:$true] %s524_s23  ;;  %s523_s12 = int_to_ptr.hbm [resolvable:$true] %s522_s12 }
  0x35   : > { %1697 = dma.hbm_to_vmem [thread:$0]  (!%p2328_p0), %s523_s12, 16, %s525_s23, %s2338_s30  }
  0x36   : > { %s537_s15 = scalar_lea.hbm %s2570_s8, %s2169_s25  ;;  %s534_s20 = scalar_lea.vmem [#allocation15], %s2321_s29 }
  0x37   : > { %s541_s17 = sshll.u32 %s534_s20, 4  ;;  %s539_s10 = sshll.u32 %s537_s15, 4  ;;  %s542_s17 = int_to_ptr.vmem [resolvable:$true] %s541_s17  ;;  %s540_s10 = int_to_ptr.hbm [resolvable:$true] %s539_s10 }
  0x38   : > { %s398_s19 = sshll.u32 %s2563_s1, 4  ;;  %s2180_s21 = smov [#allocation7]   ;;  %s399_s19 = int_to_ptr.hbm [resolvable:$true] %s398_s19 }
  0x39   : > { %1700 = dma.hbm_to_vmem [thread:$0]  (!%p2328_p0), %s540_s10, 16, %s542_s17, %s2338_s30  }
  0x3a   : > { %s400_s0 = sshll.u32 %s2180_s21, 4  ;;  %s554_s23 = scalar_lea.hbm %s2571_s9, %s2169_s25  ;;  %s401_s0 = int_to_ptr.vmem [resolvable:$true] %s400_s0 }
  0x3b   : > { %1678 = dma.hbm_to_vmem [thread:$0]  (!%p2315_p12), %s399_s19, 128, %s401_s0, [#allocation8]  }
  0x3c   : > { %s556_s12 = sshll.u32 %s554_s23, 4  ;;  %s551_s14 = scalar_lea.vmem [#allocation16], %s2321_s29  ;;  %s557_s12 = int_to_ptr.hbm [resolvable:$true] %s556_s12 }
  0x3d   : > { %s558_s28 = sshll.u32 %s551_s14, 4  ;;  %567 = sbr.rel (%p2304_p10) target bundleno = 1031 (0x407), region = 68  ;;  %s559_s28 = int_to_ptr.vmem [resolvable:$true] %s558_s28 }
  0x3e   : > { %1703 = dma.hbm_to_vmem [thread:$0]  (!%p2328_p0), %s557_s12, 16, %s559_s28, %s2338_s30  }
  0x42   : > { %2136 = dma.done.wait (%p110_p5), [#allocation5], 128  }
  0x43   : > { %2138 = vsyncadd (%p110_p5), [#allocation5], 4294967168 }
  0x44   : > { %2140 = dma.done.wait (%p110_p5), [#allocation8], 128  }
  0x45   : > { %2142 = vsyncadd (%p110_p5), [#allocation8], 4294967168  ;;  %s579_s29 = sand.u32 1, %s2276_s27   ;;  %s2415_s18 = sand.u32 1, %s2157_s22  }
  0x46   : > { %s1642_s16 = smul.u32 192, %s2415_s18  ;;  %s580_s30 = scalar_lea.sflag [#allocation5], %s579_s29 }
  0x48   : > { %s2418_s15 = scalar_lea.vmem [#allocation9], %s1642_s16 }
  0x49   : > { %2144 = dma.done.wait (%p2296_p8), %s580_s30, 4224  }
  0x4a   : > { %2146 = vsyncadd (%p2296_p8), %s580_s30, 4294963072  ;;  %s1643_s20 = smul.u32 3, %s2415_s18  ;;  %s1470_s17 = sshll.u32 %s2415_s18, 6 }
  0x4b   : > { %s602_s11 = scalar_lea.vmem [#allocation11], %s2415_s18  ;;  %s611_s26 = scalar_lea.vmem [#allocation12], %s2415_s18 }
  0x4c   : > { %s2426_s10 = scalar_lea.vmem [#allocation10], %s1643_s20  ;;  %s2430_s19 = scalar_lea.vmem [#allocation13], %s1470_s17 }
  0x4d   : > { %s630_s21 = scalar_lea.vmem [#allocation14], %s2415_s18  ;;  %s639_s0 = scalar_lea.vmem [#allocation15], %s2415_s18 }
  0x4e   : > { %s648_s2 = scalar_lea.vmem [#allocation16], %s2415_s18  ;;  %s2599_s24 = sld [smem:[#allocation23_spill]] }
  0x54   : > { %p1471_p1 = scmp.ne.s32.totalorder %s2599_s24, 0 }
  0x56   : > { %719 = sbr.rel (%p1471_p1) target bundleno = 94 (0x5e), region = 112 }
  0x5b   : > { %v720_v0 = vld [vmem:[#allocation4] sm:$0xff]  ;;  %v722_v1 = vld [vmem:[#allocation7] sm:$0xff] }
  0x5c   : > { %721 = vst [vmem:[#allocation2] sm:$0xff] %v720_v0 }
  0x5d   : > { %723 = vst [vmem:[#allocation3] sm:$0xff] %v722_v1 }
  0x5e PF: > { %v1558_v2 = vld [vmem:[%s2418_s15 + $0xa8] sm:$0xf]  ;;  %v1628_v3 = vld [vmem:[%s2418_s15 + $0xb0] sm:$0xf0]  ;;  %v1546_v4 = vld [vmem:[%s2418_s15 + $0x90] sm:$0xf] }
  0x5f   : > { %v1559_v5 = vor.u32 %v1628_v3, %v1558_v2  ;;  %v1625_v6 = vld [vmem:[%s2418_s15 + $0x98] sm:$0xf0]  ;;  %v1534_v8 = vld [vmem:[%s2418_s15 + $0x78] sm:$0xf]  ;;  %v1622_v9 = vld [vmem:[%s2418_s15 + $0x80] sm:$0xf0] }
  0x60   : > { %v1547_v7 = vor.u32 %v1625_v6, %v1546_v4  ;;  %v1627_v10 = vld [vmem:[%s2418_s15 + $0xac] sm:$0xf]  ;;  %v1560_v11 = vld [vmem:[%s2418_s15 + $0xb4] sm:$0xf0]  ;;  %v1624_v13 = vld [vmem:[%s2418_s15 + $0x94] sm:$0xf]  ;;  %v1535_v15 = vor.u32 %v1622_v9, %v1534_v8 }
  0x61   : > { %895 = vmatpush.bf16.msra.mxu0 %v1559_v5  ;;  %935 = vmatpush.bf16.msra.mxu3 %v1559_v5  ;;  %v2444_v12 = vor.u32 %v1627_v10, %v1560_v11  ;;  %v1548_v14 = vld [vmem:[%s2418_s15 + $0x9c] sm:$0xf0]  ;;  %v1619_v18 = vld [vmem:[%s2418_s15 + $0x68] sm:$0xf0]  ;;  %v1621_v19 = vld [vmem:[%s2418_s15 + $0x7c] sm:$0xf] }
  0x62   : > { %v1522_v16 = vld [vmem:[%s2418_s15 + $0x60] sm:$0xf]  ;;  %v2450_v17 = vor.u32 %v1624_v13, %v1548_v14  ;;  %v1536_v20 = vld [vmem:[%s2418_s15 + $0x84] sm:$0xf0]  ;;  %v1616_v24 = vld [vmem:[%s2418_s15 + $0x50] sm:$0xf0] }
  0x63   : > { %908 = vmatpush.bf16.msra.mxu1 %v2444_v12  ;;  %v1523_v21 = vor.u32 %v1619_v18, %v1522_v16  ;;  %v1510_v22 = vld [vmem:[%s2418_s15 + $0x48] sm:$0xf]  ;;  %v1539_v23 = vor.u32 %v1621_v19, %v1536_v20  ;;  %v1618_v25 = vld [vmem:[%s2418_s15 + $0x64] sm:$0xf]  ;;  %v1524_v26 = vld [vmem:[%s2418_s15 + $0x6c] sm:$0xf0] }
  0x64   : > { %v1511_v27 = vor.u32 %v1616_v24, %v1510_v22  ;;  %v1498_v28 = vld [vmem:[%s2418_s15 + $0x30] sm:$0xf]  ;;  %v1527_v29 = vor.u32 %v1618_v25, %v1524_v26  ;;  %v1613_v30 = vld [vmem:[%s2418_s15 + $0x38] sm:$0xf0]  ;;  %v1615_v31 = vld [vmem:[%s2418_s15 + $0x4c] sm:$0xf] }
  0x65   : > { %896 = vmatpush.bf16.msra.mxu0 %v1547_v7  ;;  %936 = vmatpush.bf16.msra.mxu3 %v1547_v7  ;;  %v1512_v32 = vld [vmem:[%s2418_s15 + $0x54] sm:$0xf0]  ;;  %v1499_v33 = vor.u32 %v1613_v30, %v1498_v28  ;;  %v1610_v36 = vld [vmem:[%s2418_s15 + $0x20] sm:$0xf0]  ;;  %v1612_v37 = vld [vmem:[%s2418_s15 + $0x34] sm:$0xf] }
  0x66   : > { %v1486_v34 = vld [vmem:[%s2418_s15 + $0x18] sm:$0xf]  ;;  %v1515_v35 = vor.u32 %v1615_v31, %v1512_v32  ;;  %v1500_v38 = vld [vmem:[%s2418_s15 + $0x3c] sm:$0xf0]  ;;  %v1607_v42 = vld [vmem:[%s2418_s15 + $0x8] sm:$0xf0] }
  0x67   : > { %909 = vmatpush.bf16.msra.mxu1 %v2450_v17  ;;  %v1487_v39 = vor.u32 %v1610_v36, %v1486_v34  ;;  %v1474_v40 = vld [vmem:[%s2418_s15] sm:$0xf]  ;;  %v1503_v41 = vor.u32 %v1612_v37, %v1500_v38  ;;  %v1609_v43 = vld [vmem:[%s2418_s15 + $0x1c] sm:$0xf]  ;;  %v1488_v44 = vld [vmem:[%s2418_s15 + $0x24] sm:$0xf0] }
  0x68   : > { %v1475_v45 = vor.u32 %v1607_v42, %v1474_v40  ;;  %v2472_v46 = vld [vmem:[#allocation2] sm:$0xff]  ;;  %v1491_v47 = vor.u32 %v1609_v43, %v1488_v44  ;;  %v2474_v48 = vld [vmem:[#allocation3] sm:$0xff]  ;;  %v1476_v50 = vld [vmem:[%s2418_s15 + $0xc] sm:$0xf0]  ;;  %s2600_s23 = sld [smem:[#allocation23_spill]] }
  0x69   : > { %897 = vmatpush.bf16.msra.mxu0 %v1535_v15  ;;  %937 = vmatpush.bf16.msra.mxu3 %v1535_v15  ;;  %v1606_v49 = vld [vmem:[%s2418_s15 + $0x4] sm:$0xf]  ;;  %v759_v51 = vpack.c.bf16 %v2472_v46, %v2472_v46  ;;  %v934_v52 = vpack.c.bf16 %v2474_v48, %v2474_v48  ;;  %v1566_v54 = vld [vmem:[%s2418_s15 + $0xb0] sm:$0xf]  ;;  %v1629_v55 = vld [vmem:[%s2418_s15 + $0xb8] sm:$0xf0] }
  0x6a   : > { %v1479_v53 = vor.u32 %v1606_v49, %v1476_v50  ;;  %v1554_v56 = vld [vmem:[%s2418_s15 + $0x98] sm:$0xf]  ;;  %v1567_v57 = vor.u32 %v1629_v55, %v1566_v54  ;;  %v1626_v58 = vld [vmem:[%s2418_s15 + $0xa0] sm:$0xf0]  ;;  %v1542_v60 = vld [vmem:[%s2418_s15 + $0x80] sm:$0xf] }
  0x6b   : > { %910 = vmatpush.bf16.msra.mxu1 %v1539_v23  ;;  %v1555_v59 = vor.u32 %v1626_v58, %v1554_v56  ;;  %v1623_v61 = vld [vmem:[%s2418_s15 + $0x88] sm:$0xf0]  ;;  %v1530_v62 = vld [vmem:[%s2418_s15 + $0x68] sm:$0xf]  ;;  %v1620_v0 = vld [vmem:[%s2418_s15 + $0x70] sm:$0xf0] }
  0x6c   : > { %921 = vmatpush.bf16.msra.mxu2 %v1567_v57  ;;  %v1543_v63 = vor.u32 %v1623_v61, %v1542_v60  ;;  %v1531_v1 = vor.u32 %v1620_v0, %v1530_v62  ;;  %v1518_v2 = vld [vmem:[%s2418_s15 + $0x50] sm:$0xf]  ;;  %v1617_v3 = vld [vmem:[%s2418_s15 + $0x58] sm:$0xf0]  ;;  %v1506_v5 = vld [vmem:[%s2418_s15 + $0x38] sm:$0xf] }
  0x6d   : > { %898 = vmatpush.bf16.msra.mxu0 %v1523_v21  ;;  %938 = vmatpush.bf16.msra.mxu3 %v1523_v21  ;;  %v1519_v4 = vor.u32 %v1617_v3, %v1518_v2  ;;  %v1614_v6 = vld [vmem:[%s2418_s15 + $0x40] sm:$0xf0]  ;;  %v1494_v8 = vld [vmem:[%s2418_s15 + $0x20] sm:$0xf]  ;;  %v1611_v9 = vld [vmem:[%s2418_s15 + $0x28] sm:$0xf0] }
  0x6e   : > { %v1507_v7 = vor.u32 %v1614_v6, %v1506_v5  ;;  %v1495_v10 = vor.u32 %v1611_v9, %v1494_v8  ;;  %v1482_v11 = vld [vmem:[%s2418_s15 + $0x8] sm:$0xf]  ;;  %v758_v20 = vld [vmem:[%s2426_s10] sm:$0x7]  ;;  %v1635_v0 = vld [vmem:[%s2430_s19 + $0x28] sm:$0xff]  ;;  %p1600_p2 = scmp.ne.s32.totalorder %s2600_s23, 1 }
  0x6f   : > { %911 = vmatpush.bf16.msra.mxu1 %v1527_v29  ;;  %v762_v21 = vperm.slane %v758_v20, 1  ;;  %v761_v22 = vperm.slane %v758_v20, 0  ;;  %v763_v43 = vperm.slane %v758_v20, 2  ;;  %v1632_v2 = vld [vmem:[%s2430_s19 + $0x10] sm:$0xff]  ;;  %v1631_v3 = vld [vmem:[%s2430_s19 + $0x8] sm:$0xff]  ;;  %s2601_s28 = sld [smem:[#allocation31_spill]] (!%p1600_p2) }
  0x70   : > { %922 = vmatpush.bf16.msra.mxu2 %v1555_v59  ;;  %s2602_s18 = sld [smem:[#allocation30_spill]] (!%p1600_p2) }
  0x71   : > { %899 = vmatpush.bf16.msra.mxu0 %v1511_v27  ;;  %939 = vmatpush.bf16.msra.mxu3 %v1511_v27 }
  0x73   : > { %912 = vmatpush.bf16.msra.mxu1 %v1515_v35 }
  0x74   : > { %923 = vmatpush.bf16.msra.mxu2 %v1543_v63 }
  0x75   : > { %900 = vmatpush.bf16.msra.mxu0 %v1499_v33  ;;  %940 = vmatpush.bf16.msra.mxu3 %v1499_v33 }
  0x77   : > { %913 = vmatpush.bf16.msra.mxu1 %v1503_v41 }
  0x78   : > { %924 = vmatpush.bf16.msra.mxu2 %v1531_v1 }
  0x79   : > { %901 = vmatpush.bf16.msra.mxu0 %v1487_v39  ;;  %941 = vmatpush.bf16.msra.mxu3 %v1487_v39 }
  0x7b   : > { %914 = vmatpush.bf16.msra.mxu1 %v1491_v47 }
  0x7c   : > { %925 = vmatpush.bf16.msra.mxu2 %v1519_v4 }
  0x7d   : > { %902 = vmatpush.bf16.msra.mxu0 %v1475_v45  ;;  %942 = vmatpush.bf16.msra.mxu3 %v1475_v45 }
  0x7f   : > { %915 = vmatpush.bf16.msra.mxu1 %v1479_v53 }
  0x80   : > { %903 = vmatmul.bf16.vlgmr.msra.gmra.mxu0 %v759_v51  ;;  %943 = vmatmul.bf16.vlgmr.msra.gmra.mxu3 %v934_v52 }
  0x81   : > { %948 = vmatpush.bf16.msrb.mxu0 %v2444_v12  ;;  %926 = vmatpush.bf16.msra.mxu2 %v1507_v7  ;;  %v1608_v12 = vld [vmem:[%s2418_s15 + $0x10] sm:$0xf0] }
  0x82   : > { %916 = vmatmul.bf16.vlgmr.msra.gmra.mxu1 %v759_v51  ;;  %v1483_v13 = vor.u32 %v1608_v12, %v1482_v11 }
  0x83   : > { %961 = vmatpush.bf16.msrb.mxu1 %v1567_v57 }
  0x85   : > { %949 = vmatpush.bf16.msrb.mxu0 %v2450_v17  ;;  %927 = vmatpush.bf16.msra.mxu2 %v1495_v10 }
  0x87   : > { %962 = vmatpush.bf16.msrb.mxu1 %v1555_v59 }
  0x89   : > { %950 = vmatpush.bf16.msrb.mxu0 %v1539_v23  ;;  %928 = vmatpush.bf16.msra.mxu2 %v1483_v13 }
  0x8b   : > { %963 = vmatpush.bf16.msrb.mxu1 %v1543_v63  ;;  %v1636_v63 = vld [vmem:[%s2430_s19 + $0x30] sm:$0xff] }
  0x8c   : > { %929 = vmatmul.bf16.vlgmr.msra.gmra.mxu2 %v759_v51 }
  0x8d   : > { %951 = vmatpush.bf16.msrb.mxu0 %v1527_v29 }
  0x8f   : > { %964 = vmatpush.bf16.msrb.mxu1 %v1531_v1  ;;  %v1633_v1 = vld [vmem:[%s2430_s19 + $0x18] sm:$0xff] }
  0x91   : > { %952 = vmatpush.bf16.msrb.mxu0 %v1515_v35 }
  0x93   : > { %965 = vmatpush.bf16.msrb.mxu1 %v1519_v4  ;;  %v1630_v4 = vld [vmem:[%s2430_s19] sm:$0xff] }
  0x95   : > { %953 = vmatpush.bf16.msrb.mxu0 %v1503_v41 }
  0x97   : > { %966 = vmatpush.bf16.msrb.mxu1 %v1507_v7 }
  0x99   : > { %954 = vmatpush.bf16.msrb.mxu0 %v1491_v47 }
  0x9b   : > { %967 = vmatpush.bf16.msrb.mxu1 %v1495_v10 }
  0x9d   : > { %955 = vmatpush.bf16.msrb.mxu0 %v1479_v53 }
  0x9f   : > { %968 = vmatpush.bf16.msrb.mxu1 %v1483_v13 }
  0xa0   : > { %956 = vmatmul.bf16.vlgmr.msrb.gmra.mxu0 %v934_v52 }
  0xa2   : > { %969 = vmatmul.bf16.vlgmr.msrb.gmra.mxu1 %v934_v52 }
  0xfd   : > { %v904_v14 = vpop.f32.mrf.mxu0 }
  0xfe   : > { %v905_v30 = vadd.f32 %v904_v14, %v761_v22 }
  0xff   : > { %v917_v15 = vpop.f32.mrf.mxu1 }
 0x100   : > { %v918_v23 = vadd.f32 %v917_v15, %v762_v21 }
 0x103   : > { %v944_v16 = vpop.f32.mrf.mxu3 }
 0x104   : > { %v945_v25 = vadd.f32 %v944_v16, %v761_v22 }
 0x105   : > { %v906_v17 = vpop.f32.mrf.mxu0 }
 0x107   : > { %v919_v18 = vpop.f32.mrf.mxu1 }
 0x10b   : > { %v946_v19 = vpop.f32.mrf.mxu3 }
 0x10f   : > { %v930_v32 = vpop.f32.mrf.mxu2 }
 0x110   : > { %v931_v47 = vadd.f32 %v930_v32, %v763_v43  ;;  %v1767_v32 = vld [vmem:[%s611_s26] ss:$0 sm:$0xff] }
 0x117   : > { %v932_v34 = vpop.f32.mrf.mxu2 }
 0x11d   : > { %v957_v24 = vpop.f32.mrf.mxu0 }
 0x11e   : > { %v958_v26 = vadd.f32 %v957_v24, %v762_v21 }
 0x11f   : > { %v970_v33 = vpop.f32.mrf.mxu1 }
 0x120   : > { %v974_v27 = vsub.f32 %v958_v26, %v918_v23  ;;  %v971_v49 = vadd.f32 %v970_v33, %v763_v43 }
 0x122   : > { %v980_v28 = vmul.f32 %v974_v27, %v945_v25  ;;  %v976_v31 = vmul.f32 %v974_v27, %v905_v30  ;;  %v975_v54 = vsub.f32 %v971_v49, %v931_v47 }
 0x124   : > { %981 = vadd.xlane.f32.xlu0 %v980_v28  ;;  %v1766_v28 = vld [vmem:[%s602_s11] ss:$0 sm:$0xff] }
 0x125   : > { %v959_v29 = vpop.f32.mrf.mxu0 }
 0x127   : > { %v972_v35 = vpop.f32.mrf.mxu1 }
 0x12c   : > { %977 = vadd.xlane.f32.xlu0 %v976_v31 }
 0x197   : > { %v982_v36 = vpop.xlane.xlu0 %981 }
 0x198   : > { %v983_v37 = vmul.f32 0.17677669, %v982_v36 }
 0x19a   : > { %v990_v38 = vsub.f32 0.0, %v983_v37 }
 0x19c   : > { %v991_v39 = vmul.f32 0.5, %v990_v38 }
 0x19e   : > { %1771 = vtanh.f32 %v991_v39 }
 0x19f   : > { %v978_v40 = vpop.xlane.xlu0 %977 }
 0x1a0   : > { %v979_v41 = vmul.f32 0.17677669, %v978_v40 }
 0x1a2   : > { %v984_v42 = vmul.f32 0.5, %v979_v41 }
 0x1a4   : > { %1773 = vtanh.f32 %v984_v42  ;;  %v1772_v44 = vpop.eup %1771 }
 0x1a5   : > { %v993_v45 = vadd.f32 1.0, %v1772_v44 }
 0x1a7   : > { %v994_v52 = vmul.f32 0.5, %v993_v45  ;;  %v1768_v45 = vld [vmem:[%s630_s21] ss:$0 sm:$0xff] }
 0x1a9   : > { %v995_v56 = vmul.f32 %v994_v52, %v975_v54 }
 0x1aa   : > { %v1774_v50 = vpop.eup %1773 }
 0x1ab   : > { %v986_v51 = vadd.f32 1.0, %v1774_v50  ;;  %v996_v59 = vsub.f32 %v971_v49, %v995_v56 }
 0x1ad   : > { %v987_v53 = vmul.f32 0.5, %v986_v51  ;;  %v2508_v61 = vadd.f32 %v996_v59, %v2474_v48  ;;  %v1634_v48 = vld [vmem:[%s2430_s19 + $0x20] sm:$0xff] }
 0x1af   : > { %v988_v55 = vmul.f32 %v987_v53, %v975_v54  ;;  %v1034_v62 = vmul.f32 %v2508_v61, %v2508_v61 }
 0x1b1   : > { %v989_v57 = vadd.f32 %v988_v55, %v931_v47 }
 0x1b3   : > { %v2502_v58 = vadd.f32 %v989_v57, %v2472_v46  ;;  %v1637_v46 = vld [vmem:[%s2430_s19 + $0x38] sm:$0xff] }
 0x1b4   : > { %1124 = vmatpush.bf16.msrb.mxu2 %v1637_v46  ;;  %1138 = vmatpush.bf16.msrb.mxu3 %v1637_v46 }
 0x1b5   : > { %1001 = vadd.xlane.f32.xlu1 %v2502_v58  ;;  %v1004_v60 = vmul.f32 %v2502_v58, %v2502_v58 }
 0x1b7   : > { %1005 = vadd.xlane.f32.xlu2 %v1004_v60 }
 0x1b8   : > { %1125 = vmatpush.bf16.msrb.mxu2 %v1636_v63  ;;  %1139 = vmatpush.bf16.msrb.mxu3 %v1636_v63 }
 0x1bc   : > { %1126 = vmatpush.bf16.msrb.mxu2 %v1635_v0  ;;  %1140 = vmatpush.bf16.msrb.mxu3 %v1635_v0 }
 0x1bd   : > { %1031 = vadd.xlane.f32.xlu1 %v2508_v61 }
 0x1bf   : > { %1035 = vadd.xlane.f32.xlu2 %v1034_v62 }
 0x1c0   : > { %1127 = vmatpush.bf16.msrb.mxu2 %v1634_v48  ;;  %1141 = vmatpush.bf16.msrb.mxu3 %v1634_v48 }
 0x1c4   : > { %1128 = vmatpush.bf16.msrb.mxu2 %v1633_v1  ;;  %1142 = vmatpush.bf16.msrb.mxu3 %v1633_v1 }
 0x1c8   : > { %1129 = vmatpush.bf16.msrb.mxu2 %v1632_v2  ;;  %1143 = vmatpush.bf16.msrb.mxu3 %v1632_v2 }
 0x1cc   : > { %1130 = vmatpush.bf16.msrb.mxu2 %v1631_v3  ;;  %1144 = vmatpush.bf16.msrb.mxu3 %v1631_v3 }
 0x1d0   : > { %1131 = vmatpush.bf16.msrb.mxu2 %v1630_v4  ;;  %1145 = vmatpush.bf16.msrb.mxu3 %v1630_v4 }
 0x228   : > { %v1002_v5 = vpop.xlane.xlu1 %1001 }
 0x229   : > { %v1003_v6 = vmul.f32 0.03125, %v1002_v5 }
 0x22a   : > { %v1006_v7 = vpop.xlane.xlu2 %1005 }
 0x22b   : > { %v1008_v8 = vmul.f32 %v1003_v6, %v1003_v6  ;;  %v1007_v9 = vmul.f32 0.03125, %v1006_v7  ;;  %v1010_v27 = vsub.f32 %v2502_v58, %v1003_v6 }
 0x22d   : > { %v1009_v10 = vsub.f32 %v1007_v9, %v1008_v8 }
 0x22f   : > { %v1011_v11 = vadd.f32 1e-05, %v1009_v10 }
 0x230   : > { %v1032_v12 = vpop.xlane.xlu1 %1031 }
 0x231   : > { %1775 = vrsqrt.f32 %v1011_v11  ;;  %v1033_v13 = vmul.f32 0.03125, %v1032_v12  ;;  %vm1018_vm1 = vweird.f32 %v1011_v11 }
 0x232   : > { %v1036_v14 = vpop.xlane.xlu2 %1035 }
 0x233   : > { %v1038_v15 = vmul.f32 %v1033_v13, %v1033_v13  ;;  %v1037_v16 = vmul.f32 0.03125, %v1036_v14  ;;  %v1040_v38 = vsub.f32 %v2508_v61, %v1033_v13  ;;  %v1769_v13 = vld [vmem:[%s639_s0] ss:$0 sm:$0xff] }
 0x235   : > { %v1039_v17 = vsub.f32 %v1037_v16, %v1038_v15  ;;  %v1770_v16 = vld [vmem:[%s648_s2] ss:$0 sm:$0xff] }
 0x237   : > { %v1776_v18 = vpop.eup %1775  ;;  %v1041_v19 = vadd.f32 1e-05, %v1039_v17 }
 0x238   : > { %v1013_v20 = vmul.f32 %v1776_v18, %v1011_v11  ;;  %vm1019_vm0 = vweird.f32 %v1776_v18 }
 0x239   : > { %1777 = vrsqrt.f32 %v1041_v19  ;;  %vm1020_vm2 = vmor %vm1018_vm1, %vm1019_vm0  ;;  %vm1048_vm4 = vweird.f32 %v1041_v19 }
 0x23a   : > { %v1014_v21 = vmul.f32 %v1776_v18, %v1013_v20 }
 0x23c   : > { %v1015_v22 = vmul.f32 0.5, %v1014_v21 }
 0x23e   : > { %v1016_v23 = vsub.f32 1.5, %v1015_v22 }
 0x23f   : > { %v1778_v24 = vpop.eup %1777 }
 0x240   : > { %v1017_v25 = vmul.f32 %v1776_v18, %v1016_v23  ;;  %v1043_v26 = vmul.f32 %v1778_v24, %v1041_v19  ;;  %vm1049_vm3 = vweird.f32 %v1778_v24 }
 0x241   : > { %vm1050_vm5 = vmor %vm1048_vm4, %vm1049_vm3 }
 0x242   : > { %v1044_v29 = vmul.f32 %v1778_v24, %v1043_v26  ;;  %v1021_v30 = vsel %vm1020_vm2, %v1776_v18, %v1017_v25 }
 0x243   : > { %v1022_v31 = vmul.f32 %v1021_v30, %v1010_v27 }
 0x244   : > { %v1045_v33 = vmul.f32 0.5, %v1044_v29 }
 0x245   : > { %v1026_v34 = vmul.f32 %v1766_v28, %v1022_v31 }
 0x246   : > { %v1046_v35 = vsub.f32 1.5, %v1045_v33 }
 0x247   : > { %v1030_v36 = vadd.f32 %v1767_v32, %v1026_v34 }
 0x248   : > { %v1047_v37 = vmul.f32 %v1778_v24, %v1046_v35 }
 0x249   : > { %v1072_v39 = vpack.c.bf16 %v1030_v36, %v1030_v36 }
 0x24a   : > { %v1051_v40 = vsel %vm1050_vm5, %v1778_v24, %v1047_v37 }
 0x24b   : > { %1132 = vmatmul.bf16.vlgmr.msrb.gmra.mxu2 %v1072_v39  ;;  %v1052_v41 = vmul.f32 %v1051_v40, %v1040_v38 }
 0x24d   : > { %v1053_v42 = vmul.f32 %v1766_v28, %v1052_v41 }
 0x24f   : > { %v1054_v43 = vadd.f32 %v1767_v32, %v1053_v42 }
 0x251   : > { %v1137_v44 = vpack.c.bf16 %v1054_v43, %v1054_v43 }
 0x253   : > { %1146 = vmatmul.bf16.vlgmr.msrb.gmra.mxu3 %v1137_v44 }
 0x2ce   : > { %v1133_v47 = vpop.f32.mrf.mxu2 }
 0x2cf   : > { %v1134_v49 = vadd.f32 %v1768_v45, %v1133_v47 }
 0x2d1   : > { %1153 = vadd.xlane.f32.xlu0 %v1134_v49  ;;  %v1156_v50 = vmul.f32 %v1134_v49, %v1134_v49 }
 0x2d3   : > { %1157 = vadd.xlane.f32.xlu2 %v1156_v50 }
 0x2d6   : > { %v1135_v51 = vpop.f32.mrf.mxu2  ;;  %v1147_v52 = vpop.f32.mrf.mxu3 }
 0x2d7   : > { %v1148_v53 = vadd.f32 %v1768_v45, %v1147_v52 }
 0x2d9   : > { %1183 = vadd.xlane.f32.xlu1 %v1148_v53  ;;  %v1186_v54 = vmul.f32 %v1148_v53, %v1148_v53 }
 0x2db   : > { %1187 = vadd.xlane.f32.xlu0 %v1186_v54 }
 0x2de   : > { %v1149_v55 = vpop.f32.mrf.mxu3 }
 0x344   : > { %v1154_v56 = vpop.xlane.xlu0 %1153 }
 0x345   : > { %v1155_v57 = vmul.f32 0.03125, %v1154_v56 }
 0x346   : > { %v1158_v58 = vpop.xlane.xlu2 %1157 }
 0x347   : > { %v1160_v59 = vmul.f32 %v1155_v57, %v1155_v57  ;;  %v1159_v60 = vmul.f32 0.03125, %v1158_v58  ;;  %v1162_v12 = vsub.f32 %v1134_v49, %v1155_v57 }
 0x349   : > { %v1161_v61 = vsub.f32 %v1159_v60, %v1160_v59 }
 0x34b   : > { %v1163_v62 = vadd.f32 1e-05, %v1161_v61 }
 0x34c   : > { %v1184_v46 = vpop.xlane.xlu1 %1183 }
 0x34d   : > { %1779 = vrsqrt.f32 %v1163_v62  ;;  %v1185_v63 = vmul.f32 0.03125, %v1184_v46  ;;  %vm1170_vm7 = vweird.f32 %v1163_v62 }
 0x34e   : > { %v1188_v0 = vpop.xlane.xlu0 %1187 }
 0x34f   : > { %v1190_v48 = vmul.f32 %v1185_v63, %v1185_v63  ;;  %v1189_v1 = vmul.f32 0.03125, %v1188_v0  ;;  %v1192_v23 = vsub.f32 %v1148_v53, %v1185_v63 }
 0x351   : > { %v1191_v2 = vsub.f32 %v1189_v1, %v1190_v48 }
 0x353   : > { %v1780_v3 = vpop.eup %1779  ;;  %v1193_v4 = vadd.f32 1e-05, %v1191_v2 }
 0x354   : > { %v1165_v5 = vmul.f32 %v1780_v3, %v1163_v62  ;;  %vm1171_vm6 = vweird.f32 %v1780_v3 }
 0x355   : > { %1781 = vrsqrt.f32 %v1193_v4  ;;  %vm1172_vm8 = vmor %vm1170_vm7, %vm1171_vm6  ;;  %vm1200_vm10 = vweird.f32 %v1193_v4 }
 0x356   : > { %v1166_v6 = vmul.f32 %v1780_v3, %v1165_v5 }
 0x358   : > { %v1167_v7 = vmul.f32 0.5, %v1166_v6 }
 0x35a   : > { %v1168_v8 = vsub.f32 1.5, %v1167_v7 }
 0x35b   : > { %v1782_v9 = vpop.eup %1781 }
 0x35c   : > { %v1169_v10 = vmul.f32 %v1780_v3, %v1168_v8  ;;  %v1195_v11 = vmul.f32 %v1782_v9, %v1193_v4  ;;  %vm1201_vm9 = vweird.f32 %v1782_v9 }
 0x35d   : > { %vm1202_vm11 = vmor %vm1200_vm10, %vm1201_vm9 }
 0x35e   : > { %v1173_v14 = vsel %vm1172_vm8, %v1780_v3, %v1169_v10  ;;  %v1196_v15 = vmul.f32 %v1782_v9, %v1195_v11 }
 0x35f   : > { %v1174_v17 = vmul.f32 %v1173_v14, %v1162_v12 }
 0x360   : > { %v1197_v18 = vmul.f32 0.5, %v1196_v15 }
 0x361   : > { %v1178_v19 = vmul.f32 %v1769_v13, %v1174_v17 }
 0x362   : > { %v1198_v20 = vsub.f32 1.5, %v1197_v18 }
 0x363   : > { %v1182_v21 = vadd.f32 %v1770_v16, %v1178_v19 }
 0x364   : > { %v1199_v22 = vmul.f32 %v1782_v9, %v1198_v20 }
 0x365   : > { %1207 = vst [vmem:[#allocation2] sm:$0xff] %v1182_v21 }
 0x366   : > { %v1203_v24 = vsel %vm1202_vm11, %v1782_v9, %v1199_v22 }
 0x367   : > { %v1204_v25 = vmul.f32 %v1203_v24, %v1192_v23 }
 0x369   : > { %v1205_v26 = vmul.f32 %v1769_v13, %v1204_v25  ;;  %1212 = sbr.rel (%p1600_p2) target bundleno = 1021 (0x3fd), region = 116 }
 0x36b   : > { %v1206_v27 = vadd.f32 %v1770_v16, %v1205_v26 }
 0x36d   : > { %1208 = vst [vmem:[#allocation3] sm:$0xff] %v1206_v27 }
 0x36e   : > { %v1216_v28 = vpack.c.bf16 %v1206_v27, %v1206_v27  ;;  %v1214_v29 = vpack.c.bf16 %v1182_v21, %v1182_v21  ;;  %v1215_v30 = vld [vmem:[%s2601_s28] sm:$0xf]  ;;  %vm1243_vm12 = vcmask 57344  }
 0x36f   : > { %v1213_v31 = vld [vmem:[%s2602_s18] sm:$0xf] }
 0x370   : > { %1224 = vmatpush.bf16.xpose.msra.mxu0 %v1216_v28  ;;  %1237 = vmatpush.bf16.xpose.msra.mxu1 %v1214_v29 }
 0x377   : > { %1225 = vmatmul.bf16.vlgmr.msra.gmra.mxu0 %v1215_v30  ;;  %1238 = vmatmul.bf16.vlgmr.msra.gmra.mxu1 %v1213_v31 }
 0x3f4   : > { %v1226_v32 = vpop.f32.mrf.mxu0  ;;  %v1239_v33 = vpop.f32.mrf.mxu1 }
 0x3f5   : > { %v1240_v34 = vadd.f32 %v1239_v33, %v1226_v32 }
 0x3f7   : > { %1244 = vst.msk [vmem:[#allocation17] sm:$0x1] %vm1243_vm12, %v1240_v34 }
 0x3fc   : > { %v1228_v35 = vpop.f32.mrf.mxu0  ;;  %v1241_v36 = vpop.f32.mrf.mxu1 }
 0x3fd PF: > { %p1709_p3 = scmp.eq.s32.totalorder %s2276_s27, 1  ;;  %s2603_s15 = sld [smem:[#allocation32_spill]] }
 0x3fe   : > { %s2181_s17 = smov [#allocation17]  }
 0x3ff   : > { %s1252_s10 = sshll.u32 %s2181_s17, 4  ;;  %s1253_s10 = int_to_ptr.vmem [resolvable:$true] %s1252_s10 }
 0x403   : > { %s1254_s20 = sshll.u32 %s2603_s15, 4  ;;  %s1255_s20 = int_to_ptr.hbm [resolvable:$true] %s1254_s20 }
 0x404   : > { %1669 = dma.vmem_to_hbm [thread:$0]  (%p1709_p3), %s1253_s10, 16, %s1255_s20, [#allocation6]  }
 0x405   : > { %2148 = dma.done.wait (%p1709_p3), [#allocation6], 16  }
 0x406   : > { %2150 = vsyncadd (%p1709_p3), [#allocation6], 4294967280 }
 0x407 PF: > { %s2604_s11 = sld [smem:[#allocation24_spill]]  ;;  %s2608_s21 = smov %s2157_s22 }
 0x408   : > { %s2605_s19 = sld [smem:[#allocation22_spill]]  ;;  %s2610_s24 = smov %s2169_s25 }
 0x409   : > { %s2606_s23 = sld [smem:[#allocation27_spill]] }
 0x40a   : > { %s2607_s27 = sld [smem:[#allocation25_spill]] }
 0x40d   : > { %s25_s26 = sadd.s32 1, %s2604_s11  }
 0x40e   : > { %p22_p4 = scmp.ge.s32.totalorder %s25_s26, 4   ;;  %s2609_s22 = smov %s2605_s19 }
 0x410   : > { %s2611_s25 = smov %s2607_s27  ;;  %24 = sbr.rel (!%p22_p4) target bundleno = 11 (0xb), region = 200 }
 0x415   :  { %1268 = vsyncpa [#allocation5], 1 }
 0x416   :  { %1270 = vsyncpa [#allocation5 + $0x1], 1 }
 0x417   :  { %1271 = vsyncpa [#allocation8], 1 }
 0x418   :  { %1272 = vsyncpa [#allocation6], 1 }
 0x419   :  { %1274 = vsyncpa [#allocation6 + $0x1], 1 }

</bundles_post_ra>
